<compile_context>
chip_gen: v5e
topology: v5e:2x2
jax: 0.10.0
libtpu: 0.0.40
codegen_flags: <defaults>
</compile_context>

<pallas_src>
import math
import functools

import jax
import jax.numpy as jnp
from jax.experimental import pallas as pl
from jax.experimental.pallas import tpu as pltpu


def _mha_kernel(q_in_ref, k_in_ref, v_in_ref,
                wq_ref, bq_ref, wk_ref, bk_ref, wv_ref, bv_ref,
                wo_ref, bo_ref,
                out_ref,
                k_scr, v_scr, acc_ref,
                *, head_dim):
    """One grid step = (one batch element, one query tile, one head)."""
    qi = pl.program_id(1)
    h = pl.program_id(2)
    num_heads = pl.num_programs(2)
    scale = 1.0 / math.sqrt(head_dim)
    cdt = k_scr.dtype  # MXU operand dtype == input dtype (bf16-capable)

    # --- K/V projection for this head: once per batch element, cached in VMEM.
    @pl.when(qi == 0)
    def _():
        x_k = k_in_ref[0]                                           # (S, E)
        x_v = v_in_ref[0]
        k_h = jnp.dot(x_k, wk_ref[0],
                      preferred_element_type=jnp.float32) + bk_ref[0, 0]
        v_h = jnp.dot(x_v, wv_ref[0],
                      preferred_element_type=jnp.float32) + bv_ref[0, 0]
        k_scr[h] = k_h.astype(cdt)                                  # (S, hd)
        v_scr[h] = v_h.astype(cdt)

    # --- Zero the fused output-projection accumulator at the first head.
    @pl.when(h == 0)
    def _():
        acc_ref[...] = jnp.zeros_like(acc_ref)

    # --- Q projection for this (query tile, head); fold 1/sqrt(hd) into Q
    #     ((tq, hd) elements instead of scaling the (tq, S) score tile).
    x_q = q_in_ref[0]                                               # (tq, E)
    q_h = (jnp.dot(x_q, wq_ref[0], preferred_element_type=jnp.float32)
           + bq_ref[0, 0]) * scale
    q_h = q_h.astype(cdt)                                           # (tq, hd)

    k_h = k_scr[h]                                                  # (S, hd)
    v_h = v_scr[h]                                                  # (S, hd)

    # --- scores = Q K^T with no explicit transpose: contract dim 1 of both.
    scores = jax.lax.dot_general(
        q_h, k_h, dimension_numbers=(((1,), (1,)), ((), ())),
        preferred_element_type=jnp.float32)                         # (tq, S) f32

    # --- Numerically-stable softmax (f32); EUP approximate reciprocal.
    m = jnp.max(scores, axis=-1, keepdims=True)
    e = jnp.exp(scores - m)
    denom = jnp.sum(e, axis=-1, keepdims=True)
    p = e * pl.reciprocal(denom, approx=True)                       # (tq, S)

    ctx_h = jnp.dot(p.astype(cdt), v_h,
                    preferred_element_type=jnp.float32)             # (tq, hd)

    # --- Fused output projection: acc += ctx_h @ Wo[h]  (no concatenate).
    acc_ref[...] += jnp.dot(ctx_h.astype(cdt), wo_ref[0],
                            preferred_element_type=jnp.float32)     # (tq, E)

    # --- Emit after the last head.
    @pl.when(h == num_heads - 1)
    def _():
        out_ref[0] = (acc_ref[...] + bo_ref[0]).astype(out_ref.dtype)


def _pick_q_tile(seq_len):
    """Largest clean query tile: whole sequence if short, else an 8-aligned
    divisor <= 512 so the (tq, S) score tile stays bounded (v7x: 64 MiB VMEM)."""
    if seq_len <= 512:
        return seq_len
    for tq in (512, 384, 256, 128, 64, 32, 16, 8):
        if seq_len % tq == 0:
            return tq
    return seq_len


def _pick_vmem_limit():
    """Raise the scoped-VMEM limit where the chip allows it (128 MiB on
    v5e/v6e, 64 MiB on v7x); fall back to the compiler default otherwise."""
    try:
        cap = pltpu.get_tpu_info().vmem_capacity_bytes
        return int(min(cap * 3 // 4, 100 * 2 ** 20))
    except Exception:
        return None


def multi_headed_attention(query_input, key_input, value_input, params,
                           *, num_heads):
    """params: dict with wq, bq, wk, bk, wv, bv, wo, bo.
    w* are [in, out] (already transposed from PyTorch's [out, in]); b* are [E]."""
    B, Sq, E = query_input.shape
    _, S, _ = key_input.shape
    assert E % num_heads == 0
    hd = E // num_heads
    tq = _pick_q_tile(Sq)
    n_q = Sq // tq
    cdt = query_input.dtype

    # Host-side layout plumbing: reshape weights/biases so each head's slice is
    # a full-trailing-dims DMA block (valid for any head_dim); the kernel never
    # slices lanes.  w[:, h*hd:(h+1)*hd] == wq3[h]; wo[h*hd:(h+1)*hd, :] == wo3[h].
    wq3 = params["wq"].reshape(E, num_heads, hd).transpose(1, 0, 2)   # (H, E, hd)
    wk3 = params["wk"].reshape(E, num_heads, hd).transpose(1, 0, 2)
    wv3 = params["wv"].reshape(E, num_heads, hd).transpose(1, 0, 2)
    wo3 = params["wo"].reshape(num_heads, hd, E)                      # (H, hd, E)
    bq3 = params["bq"].reshape(num_heads, 1, hd)
    bk3 = params["bk"].reshape(num_heads, 1, hd)
    bv3 = params["bv"].reshape(num_heads, 1, hd)
    bo2 = params["bo"].reshape(1, E)

    q_spec = pl.BlockSpec((1, tq, E), lambda b, qi, h: (b, qi, 0))
    kv_spec = pl.BlockSpec((1, S, E), lambda b, qi, h: (b, 0, 0))
    wqkv_spec = pl.BlockSpec((1, E, hd), lambda b, qi, h: (h, 0, 0))
    bqkv_spec = pl.BlockSpec((1, 1, hd), lambda b, qi, h: (h, 0, 0))
    wo_spec = pl.BlockSpec((1, hd, E), lambda b, qi, h: (h, 0, 0))
    bo_spec = pl.BlockSpec((1, E), lambda b, qi, h: (0, 0))
    out_spec = pl.BlockSpec((1, tq, E), lambda b, qi, h: (b, qi, 0))

    kernel = functools.partial(_mha_kernel, head_dim=hd)

    return pl.pallas_call(
        kernel,
        out_shape=jax.ShapeDtypeStruct((B, Sq, E), query_input.dtype),
        grid_spec=pltpu.PrefetchScalarGridSpec(
            num_scalar_prefetch=0,
            grid=(B, n_q, num_heads),
            in_specs=[q_spec, kv_spec, kv_spec,
                      wqkv_spec, bqkv_spec,      # Wq, bq
                      wqkv_spec, bqkv_spec,      # Wk, bk
                      wqkv_spec, bqkv_spec,      # Wv, bv
                      wo_spec, bo_spec],         # Wo, bo
            out_specs=out_spec,
            scratch_shapes=[
                pltpu.VMEM((num_heads, S, hd), cdt),        # cached K (per b)
                pltpu.VMEM((num_heads, S, hd), cdt),        # cached V (per b)
                pltpu.VMEM((tq, E), jnp.float32),           # out-proj accumulator
            ],
        ),
        compiler_params=pltpu.CompilerParams(
            # head axis carries the accumulator, query-tile axis carries the
            # cached K/V -> both "arbitrary"; batch is megacore-parallel.
            dimension_semantics=("parallel", "arbitrary", "arbitrary"),
            vmem_limit_bytes=_pick_vmem_limit(),
        ),
    )(query_input, key_input, value_input,
      wq3, bq3, wk3, bk3, wv3, bv3, wo3, bo2)


def _reference(query_input, key_input, value_input, params, *, num_heads):
    """Pure-JAX reference mirroring the PyTorch forward (eval mode, mask=None)."""
    B, S, E = query_input.shape
    hd = E // num_heads

    def lin(x, w, b):
        return x @ w + b

    q = lin(query_input, params["wq"], params["bq"]).reshape(B, S, num_heads, hd).transpose(0, 2, 1, 3)
    k = lin(key_input, params["wk"], params["bk"]).reshape(B, S, num_heads, hd).transpose(0, 2, 1, 3)
    v = lin(value_input, params["wv"], params["bv"]).reshape(B, S, num_heads, hd).transpose(0, 2, 1, 3)

    scores = jnp.einsum("bhqd,bhkd->bhqk", q, k) / math.sqrt(hd)
    weights = jax.nn.softmax(scores, axis=-1)
    out = jnp.einsum("bhqk,bhkd->bhqd", weights, v)
    out = out.transpose(0, 2, 1, 3).reshape(B, S, E)
    return lin(out, params["wo"], params["bo"])


if __name__ == "__main__":
    B, S, E, H = 2, 8, 32, 4

    key = jax.random.PRNGKey(0)
    keys = jax.random.split(key, 12)

    scale = 1.0 / math.sqrt(E)
    params = {
        "wq": jax.random.uniform(keys[0], (E, E), jnp.float32, -scale, scale),
        "bq": jax.random.uniform(keys[1], (E,), jnp.float32, -scale, scale),
        "wk": jax.random.uniform(keys[2], (E, E), jnp.float32, -scale, scale),
        "bk": jax.random.uniform(keys[3], (E,), jnp.float32, -scale, scale),
        "wv": jax.random.uniform(keys[4], (E, E), jnp.float32, -scale, scale),
        "bv": jax.random.uniform(keys[5], (E,), jnp.float32, -scale, scale),
        "wo": jax.random.uniform(keys[6], (E, E), jnp.float32, -scale, scale),
        "bo": jax.random.uniform(keys[7], (E,), jnp.float32, -scale, scale),
    }

    q_in = jax.random.normal(keys[8], (B, S, E), jnp.float32)
    k_in = jax.random.normal(keys[9], (B, S, E), jnp.float32)
    v_in = jax.random.normal(keys[10], (B, S, E), jnp.float32)

    out = multi_headed_attention(q_in, k_in, v_in, params, num_heads=H)
    out = jax.block_until_ready(out)

    ref = _reference(q_in, k_in, v_in, params, num_heads=H)
    assert out.shape == (B, S, E)
    # Tolerance 1e-3: the softmax denominator uses the EUP approximate
    # reciprocal (pl.reciprocal(approx=True)); everything else is f32-exact.
    assert jnp.allclose(out, ref, atol=1e-3, rtol=1e-3), \
        f"max err {jnp.max(jnp.abs(out - ref))}"

    print("KERNEL_OK")
</pallas_src>

<mosaic_0001>
module attributes {stable_mosaic.version = 11 : i64} {
  func.func @_mha_kernel(%arg0: i32, %arg1: i32, %arg2: i32, %arg3: memref<1x8x32xf32, #tpu.memory_space<vmem>>, %arg4: memref<1x8x32xf32, #tpu.memory_space<vmem>>, %arg5: memref<1x8x32xf32, #tpu.memory_space<vmem>>, %arg6: memref<1x32x8xf32, #tpu.memory_space<vmem>>, %arg7: memref<1x1x8xf32, #tpu.memory_space<vmem>>, %arg8: memref<1x32x8xf32, #tpu.memory_space<vmem>>, %arg9: memref<1x1x8xf32, #tpu.memory_space<vmem>>, %arg10: memref<1x32x8xf32, #tpu.memory_space<vmem>>, %arg11: memref<1x1x8xf32, #tpu.memory_space<vmem>>, %arg12: memref<1x8x32xf32, #tpu.memory_space<vmem>>, %arg13: memref<1x32xf32, #tpu.memory_space<vmem>>, %arg14: memref<1x8x32xf32, #tpu.memory_space<vmem>>, %arg15: memref<4x8x8xf32, #tpu.memory_space<vmem>>, %arg16: memref<4x8x8xf32, #tpu.memory_space<vmem>>, %arg17: memref<8x32xf32, #tpu.memory_space<vmem>>) attributes {dimension_semantics = [#tpu.dimension_semantics<parallel>, #tpu.dimension_semantics<arbitrary>, #tpu.dimension_semantics<arbitrary>], iteration_bounds = array<i64: 2, 1, 4>, scalar_prefetch = 0 : i64, scratch_operands = 3 : i64, tpu.core_type = #tpu.core_type<tc>, window_params = [{transform_indices = @transform_0, window_bounds = array<i64: 1, 8, 32>}, {transform_indices = @transform_1, window_bounds = array<i64: 1, 8, 32>}, {transform_indices = @transform_2, window_bounds = array<i64: 1, 8, 32>}, {transform_indices = @transform_3, window_bounds = array<i64: 1, 32, 8>}, {transform_indices = @transform_4, window_bounds = array<i64: 1, 1, 8>}, {transform_indices = @transform_5, window_bounds = array<i64: 1, 32, 8>}, {transform_indices = @transform_6, window_bounds = array<i64: 1, 1, 8>}, {transform_indices = @transform_7, window_bounds = array<i64: 1, 32, 8>}, {transform_indices = @transform_8, window_bounds = array<i64: 1, 1, 8>}, {transform_indices = @transform_9, window_bounds = array<i64: 1, 8, 32>}, {pipeline_mode = #tpu.pipeline_mode<synchronous>, transform_indices = @transform_10, window_bounds = array<i64: 1, 32>}, {transform_indices = @transform_11, window_bounds = array<i64: 1, 8, 32>}]} {
    %c0_i32 = arith.constant 0 : i32
    %0 = arith.cmpi eq, %arg1, %c0_i32 : i32
    %1 = arith.extui %0 : i1 to i32
    %c0_i32_0 = arith.constant 0 : i32
    %2 = arith.cmpi ne, %1, %c0_i32_0 : i32
    scf.if %2 {
      %c0_29 = arith.constant 0 : index
      %c0_30 = arith.constant 0 : index
      %c0_31 = arith.constant 0 : index
      %45 = vector.load %arg4[%c0_29, %c0_30, %c0_31] : memref<1x8x32xf32, #tpu.memory_space<vmem>>, vector<1x8x32xf32>
      %46 = vector.shape_cast %45 : vector<1x8x32xf32> to vector<8x32xf32>
      %c0_32 = arith.constant 0 : index
      %c0_33 = arith.constant 0 : index
      %c0_34 = arith.constant 0 : index
      %47 = vector.load %arg5[%c0_32, %c0_33, %c0_34] : memref<1x8x32xf32, #tpu.memory_space<vmem>>, vector<1x8x32xf32>
      %48 = vector.shape_cast %47 : vector<1x8x32xf32> to vector<8x32xf32>
      %c0_35 = arith.constant 0 : index
      %c0_36 = arith.constant 0 : index
      %c0_37 = arith.constant 0 : index
      %49 = vector.load %arg8[%c0_35, %c0_36, %c0_37] : memref<1x32x8xf32, #tpu.memory_space<vmem>>, vector<1x32x8xf32>
      %50 = vector.shape_cast %49 : vector<1x32x8xf32> to vector<32x8xf32>
      %cst_38 = arith.constant dense<0.000000e+00> : vector<8x8xf32>
      %51 = tpu.matmul %46, %50, %cst_38 {dimension_numbers = #tpu.dot_dimension_numbers<[1], [0], [0], [1], [0, 0, 1, 1], [], []>} : vector<8x32xf32>, vector<32x8xf32>, vector<8x8xf32> -> vector<8x8xf32>
      %c0_39 = arith.constant 0 : index
      %c0_40 = arith.constant 0 : index
      %c0_41 = arith.constant 0 : index
      %52 = vector.load %arg9[%c0_39, %c0_40, %c0_41] : memref<1x1x8xf32, #tpu.memory_space<vmem>>, vector<1x1x8xf32>
      %53 = vector.shape_cast %52 : vector<1x1x8xf32> to vector<8xf32>
      %54 = vector.shape_cast %53 : vector<8xf32> to vector<1x8xf32>
      %55 = vector.broadcast %54 : vector<1x8xf32> to vector<8x8xf32>
      %56 = arith.addf %51, %55 : vector<8x8xf32>
      %c0_42 = arith.constant 0 : index
      %c0_43 = arith.constant 0 : index
      %c0_44 = arith.constant 0 : index
      %57 = vector.load %arg10[%c0_42, %c0_43, %c0_44] : memref<1x32x8xf32, #tpu.memory_space<vmem>>, vector<1x32x8xf32>
      %58 = vector.shape_cast %57 : vector<1x32x8xf32> to vector<32x8xf32>
      %cst_45 = arith.constant dense<0.000000e+00> : vector<8x8xf32>
      %59 = tpu.matmul %48, %58, %cst_45 {dimension_numbers = #tpu.dot_dimension_numbers<[1], [0], [0], [1], [0, 0, 1, 1], [], []>} : vector<8x32xf32>, vector<32x8xf32>, vector<8x8xf32> -> vector<8x8xf32>
      %c0_46 = arith.constant 0 : index
      %c0_47 = arith.constant 0 : index
      %c0_48 = arith.constant 0 : index
      %60 = vector.load %arg11[%c0_46, %c0_47, %c0_48] : memref<1x1x8xf32, #tpu.memory_space<vmem>>, vector<1x1x8xf32>
      %61 = vector.shape_cast %60 : vector<1x1x8xf32> to vector<8xf32>
      %62 = vector.shape_cast %61 : vector<8xf32> to vector<1x8xf32>
      %63 = vector.broadcast %62 : vector<1x8xf32> to vector<8x8xf32>
      %64 = arith.addf %59, %63 : vector<8x8xf32>
      %65 = arith.index_cast %arg2 : i32 to index
      %c0_49 = arith.constant 0 : index
      %c0_50 = arith.constant 0 : index
      %66 = vector.load %arg15[%65, %c0_49, %c0_50] : memref<4x8x8xf32, #tpu.memory_space<vmem>>, vector<1x8x8xf32>
      %67 = vector.shape_cast %66 : vector<1x8x8xf32> to vector<8x8xf32>
      %68 = vector.shape_cast %56 : vector<8x8xf32> to vector<1x8x8xf32>
      tpu.vector_store %arg15[%65, %c0_49, %c0_50], %68 {strides = array<i32>} : memref<4x8x8xf32, #tpu.memory_space<vmem>>, vector<1x8x8xf32>,
      %69 = arith.index_cast %arg2 : i32 to index
      %c0_51 = arith.constant 0 : index
      %c0_52 = arith.constant 0 : index
      %70 = vector.load %arg16[%69, %c0_51, %c0_52] : memref<4x8x8xf32, #tpu.memory_space<vmem>>, vector<1x8x8xf32>
      %71 = vector.shape_cast %70 : vector<1x8x8xf32> to vector<8x8xf32>
      %72 = vector.shape_cast %64 : vector<8x8xf32> to vector<1x8x8xf32>
      tpu.vector_store %arg16[%69, %c0_51, %c0_52], %72 {strides = array<i32>} : memref<4x8x8xf32, #tpu.memory_space<vmem>>, vector<1x8x8xf32>,
    } else {
    }
    %c0_i32_1 = arith.constant 0 : i32
    %3 = arith.cmpi eq, %arg2, %c0_i32_1 : i32
    %4 = arith.extui %3 : i1 to i32
    %c0_i32_2 = arith.constant 0 : i32
    %5 = arith.cmpi ne, %4, %c0_i32_2 : i32
    scf.if %5 {
      %cst_29 = arith.constant 0.000000e+00 : f32
      %45 = vector.broadcast %cst_29 : f32 to vector<8x32xf32>
      %c0_30 = arith.constant 0 : index
      %c0_31 = arith.constant 0 : index
      %46 = vector.load %arg17[%c0_30, %c0_31] : memref<8x32xf32, #tpu.memory_space<vmem>>, vector<8x32xf32>
      tpu.vector_store %arg17[%c0_30, %c0_31], %45 {strides = array<i32>} : memref<8x32xf32, #tpu.memory_space<vmem>>, vector<8x32xf32>,
    } else {
    }
    %c0 = arith.constant 0 : index
    %c0_3 = arith.constant 0 : index
    %c0_4 = arith.constant 0 : index
    %6 = vector.load %arg3[%c0, %c0_3, %c0_4] : memref<1x8x32xf32, #tpu.memory_space<vmem>>, vector<1x8x32xf32>
    %7 = vector.shape_cast %6 : vector<1x8x32xf32> to vector<8x32xf32>
    %c0_5 = arith.constant 0 : index
    %c0_6 = arith.constant 0 : index
    %c0_7 = arith.constant 0 : index
    %8 = vector.load %arg6[%c0_5, %c0_6, %c0_7] : memref<1x32x8xf32, #tpu.memory_space<vmem>>, vector<1x32x8xf32>
    %9 = vector.shape_cast %8 : vector<1x32x8xf32> to vector<32x8xf32>
    %cst = arith.constant dense<0.000000e+00> : vector<8x8xf32>
    %10 = tpu.matmul %7, %9, %cst {dimension_numbers = #tpu.dot_dimension_numbers<[1], [0], [0], [1], [0, 0, 1, 1], [], []>} : vector<8x32xf32>, vector<32x8xf32>, vector<8x8xf32> -> vector<8x8xf32>
    %c0_8 = arith.constant 0 : index
    %c0_9 = arith.constant 0 : index
    %c0_10 = arith.constant 0 : index
    %11 = vector.load %arg7[%c0_8, %c0_9, %c0_10] : memref<1x1x8xf32, #tpu.memory_space<vmem>>, vector<1x1x8xf32>
    %12 = vector.shape_cast %11 : vector<1x1x8xf32> to vector<8xf32>
    %13 = vector.shape_cast %12 : vector<8xf32> to vector<1x8xf32>
    %14 = vector.broadcast %13 : vector<1x8xf32> to vector<8x8xf32>
    %15 = arith.addf %10, %14 : vector<8x8xf32>
    %cst_11 = arith.constant 0.353553385 : f32
    %16 = vector.broadcast %cst_11 : f32 to vector<8x8xf32>
    %17 = arith.mulf %15, %16 : vector<8x8xf32>
    %18 = arith.index_cast %arg2 : i32 to index
    %c0_12 = arith.constant 0 : index
    %c0_13 = arith.constant 0 : index
    %19 = vector.load %arg15[%18, %c0_12, %c0_13] : memref<4x8x8xf32, #tpu.memory_space<vmem>>, vector<1x8x8xf32>
    %20 = vector.shape_cast %19 : vector<1x8x8xf32> to vector<8x8xf32>
    %21 = arith.index_cast %arg2 : i32 to index
    %c0_14 = arith.constant 0 : index
    %c0_15 = arith.constant 0 : index
    %22 = vector.load %arg16[%21, %c0_14, %c0_15] : memref<4x8x8xf32, #tpu.memory_space<vmem>>, vector<1x8x8xf32>
    %23 = vector.shape_cast %22 : vector<1x8x8xf32> to vector<8x8xf32>
    %cst_16 = arith.constant dense<0.000000e+00> : vector<8x8xf32>
    %24 = tpu.matmul %17, %20, %cst_16 {dimension_numbers = #tpu.dot_dimension_numbers<[1], [1], [0], [0], [0, 0, 1, 0], [], []>} : vector<8x8xf32>, vector<8x8xf32>, vector<8x8xf32> -> vector<8x8xf32>
    %cst_17 = arith.constant dense<0xFF800000> : vector<8xf32>
    %25 = vector.multi_reduction <maximumf>, %24, %cst_17 [1] : vector<8x8xf32> to vector<8xf32>
    %26 = vector.shape_cast %25 : vector<8xf32> to vector<8x1xf32>
    %27 = vector.broadcast %26 : vector<8x1xf32> to vector<8x8xf32>
    %28 = arith.subf %24, %27 : vector<8x8xf32>
    %29 = math.exp %28 : vector<8x8xf32>
    %cst_18 = arith.constant dense<0.000000e+00> : vector<8xf32>
    %30 = vector.multi_reduction <add>, %29, %cst_18 [1] : vector<8x8xf32> to vector<8xf32>
    %31 = vector.shape_cast %30 : vector<8xf32> to vector<8x1xf32>
    %32 = tpu.reciprocal %31 {approx = true} : vector<8x1xf32> -> vector<8x1xf32>
    %33 = vector.broadcast %32 : vector<8x1xf32> to vector<8x8xf32>
    %34 = arith.mulf %29, %33 : vector<8x8xf32>
    %cst_19 = arith.constant dense<0.000000e+00> : vector<8x8xf32>
    %35 = tpu.matmul %34, %23, %cst_19 {dimension_numbers = #tpu.dot_dimension_numbers<[1], [0], [0], [1], [0, 0, 1, 1], [], []>} : vector<8x8xf32>, vector<8x8xf32>, vector<8x8xf32> -> vector<8x8xf32>
    %c0_20 = arith.constant 0 : index
    %c0_21 = arith.constant 0 : index
    %36 = vector.load %arg17[%c0_20, %c0_21] : memref<8x32xf32, #tpu.memory_space<vmem>>, vector<8x32xf32>
    %c0_22 = arith.constant 0 : index
    %c0_23 = arith.constant 0 : index
    %c0_24 = arith.constant 0 : index
    %37 = vector.load %arg12[%c0_22, %c0_23, %c0_24] : memref<1x8x32xf32, #tpu.memory_space<vmem>>, vector<1x8x32xf32>
    %38 = vector.shape_cast %37 : vector<1x8x32xf32> to vector<8x32xf32>
    %cst_25 = arith.constant dense<0.000000e+00> : vector<8x32xf32>
    %39 = tpu.matmul %35, %38, %cst_25 {dimension_numbers = #tpu.dot_dimension_numbers<[1], [0], [0], [1], [0, 0, 1, 1], [], []>} : vector<8x8xf32>, vector<8x32xf32>, vector<8x32xf32> -> vector<8x32xf32>
    %40 = arith.addf %36, %39 : vector<8x32xf32>
    %c0_26 = arith.constant 0 : index
    %c0_27 = arith.constant 0 : index
    %41 = vector.load %arg17[%c0_26, %c0_27] : memref<8x32xf32, #tpu.memory_space<vmem>>, vector<8x32xf32>
    tpu.vector_store %arg17[%c0_26, %c0_27], %40 {strides = array<i32>} : memref<8x32xf32, #tpu.memory_space<vmem>>, vector<8x32xf32>,
    %c3_i32 = arith.constant 3 : i32
    %42 = arith.cmpi eq, %arg2, %c3_i32 : i32
    %43 = arith.extui %42 : i1 to i32
    %c0_i32_28 = arith.constant 0 : i32
    %44 = arith.cmpi ne, %43, %c0_i32_28 : i32
    scf.if %44 {
      %c0_29 = arith.constant 0 : index
      %c0_30 = arith.constant 0 : index
      %45 = vector.load %arg17[%c0_29, %c0_30] : memref<8x32xf32, #tpu.memory_space<vmem>>, vector<8x32xf32>
      %c0_31 = arith.constant 0 : index
      %c0_32 = arith.constant 0 : index
      %46 = vector.load %arg13[%c0_31, %c0_32] : memref<1x32xf32, #tpu.memory_space<vmem>>, vector<1x32xf32>
      %47 = vector.shape_cast %46 : vector<1x32xf32> to vector<32xf32>
      %48 = vector.shape_cast %47 : vector<32xf32> to vector<1x32xf32>
      %49 = vector.broadcast %48 : vector<1x32xf32> to vector<8x32xf32>
      %50 = arith.addf %45, %49 : vector<8x32xf32>
      %c0_33 = arith.constant 0 : index
      %c0_34 = arith.constant 0 : index
      %c0_35 = arith.constant 0 : index
      %51 = vector.load %arg14[%c0_33, %c0_34, %c0_35] : memref<1x8x32xf32, #tpu.memory_space<vmem>>, vector<1x8x32xf32>
      %52 = vector.shape_cast %51 : vector<1x8x32xf32> to vector<8x32xf32>
      %53 = vector.shape_cast %50 : vector<8x32xf32> to vector<1x8x32xf32>
      tpu.vector_store %arg14[%c0_33, %c0_34, %c0_35], %53 {strides = array<i32>} : memref<1x8x32xf32, #tpu.memory_space<vmem>>, vector<1x8x32xf32>,
    } else {
    }
    return
  }
  func.func @transform_0(%arg0: i32, %arg1: i32, %arg2: i32) -> (i32, i32, i32) {
    %c0_i32 = arith.constant 0 : i32
    %c0_i32_0 = arith.constant 0 : i32
    return %arg0, %arg1, %c0_i32 : i32, i32, i32
  }
  func.func @transform_1(%arg0: i32, %arg1: i32, %arg2: i32) -> (i32, i32, i32) {
    %c0_i32 = arith.constant 0 : i32
    %c0_i32_0 = arith.constant 0 : i32
    %c0_i32_1 = arith.constant 0 : i32
    return %arg0, %c0_i32, %c0_i32_0 : i32, i32, i32
  }
  func.func @transform_2(%arg0: i32, %arg1: i32, %arg2: i32) -> (i32, i32, i32) {
    %c0_i32 = arith.constant 0 : i32
    %c0_i32_0 = arith.constant 0 : i32
    %c0_i32_1 = arith.constant 0 : i32
    return %arg0, %c0_i32, %c0_i32_0 : i32, i32, i32
  }
  func.func @transform_3(%arg0: i32, %arg1: i32, %arg2: i32) -> (i32, i32, i32) {
    %c0_i32 = arith.constant 0 : i32
    %c0_i32_0 = arith.constant 0 : i32
    %c0_i32_1 = arith.constant 0 : i32
    return %arg2, %c0_i32, %c0_i32_0 : i32, i32, i32
  }
  func.func @transform_4(%arg0: i32, %arg1: i32, %arg2: i32) -> (i32, i32, i32) {
    %c0_i32 = arith.constant 0 : i32
    %c0_i32_0 = arith.constant 0 : i32
    %c0_i32_1 = arith.constant 0 : i32
    return %arg2, %c0_i32, %c0_i32_0 : i32, i32, i32
  }
  func.func @transform_5(%arg0: i32, %arg1: i32, %arg2: i32) -> (i32, i32, i32) {
    %c0_i32 = arith.constant 0 : i32
    %c0_i32_0 = arith.constant 0 : i32
    %c0_i32_1 = arith.constant 0 : i32
    return %arg2, %c0_i32, %c0_i32_0 : i32, i32, i32
  }
  func.func @transform_6(%arg0: i32, %arg1: i32, %arg2: i32) -> (i32, i32, i32) {
    %c0_i32 = arith.constant 0 : i32
    %c0_i32_0 = arith.constant 0 : i32
    %c0_i32_1 = arith.constant 0 : i32
    return %arg2, %c0_i32, %c0_i32_0 : i32, i32, i32
  }
  func.func @transform_7(%arg0: i32, %arg1: i32, %arg2: i32) -> (i32, i32, i32) {
    %c0_i32 = arith.constant 0 : i32
    %c0_i32_0 = arith.constant 0 : i32
    %c0_i32_1 = arith.constant 0 : i32
    return %arg2, %c0_i32, %c0_i32_0 : i32, i32, i32
  }
  func.func @transform_8(%arg0: i32, %arg1: i32, %arg2: i32) -> (i32, i32, i32) {
    %c0_i32 = arith.constant 0 : i32
    %c0_i32_0 = arith.constant 0 : i32
    %c0_i32_1 = arith.constant 0 : i32
    return %arg2, %c0_i32, %c0_i32_0 : i32, i32, i32
  }
  func.func @transform_9(%arg0: i32, %arg1: i32, %arg2: i32) -> (i32, i32, i32) {
    %c0_i32 = arith.constant 0 : i32
    %c0_i32_0 = arith.constant 0 : i32
    %c0_i32_1 = arith.constant 0 : i32
    return %arg2, %c0_i32, %c0_i32_0 : i32, i32, i32
  }
  func.func @transform_10(%arg0: i32, %arg1: i32, %arg2: i32) -> (i32, i32) {
    %c0_i32 = arith.constant 0 : i32
    %c0_i32_0 = arith.constant 0 : i32
    %c0_i32_1 = arith.constant 0 : i32
    return %c0_i32, %c0_i32_0 : i32, i32
  }
  func.func @transform_11(%arg0: i32, %arg1: i32, %arg2: i32) -> (i32, i32, i32) {
    %c0_i32 = arith.constant 0 : i32
    %c0_i32_0 = arith.constant 0 : i32
    return %arg0, %arg1, %c0_i32 : i32, i32, i32
  }
}

</mosaic_0001>

<bundles_post_ra>
// kernel: tpu_custom_call.1
= control target key start
LH: loop header
LB: loop body
LE: loop exit
PB: predicated region body
PF: predicated region fallthrough
CT: control target
= control target key end

     0   :  { %s1470_s0 = inlined_call_operand.vmem [shape: f32[2,8,32], index: 0, kind: input, shape index: {}]   ;;  %s1471_s1 = inlined_call_operand.vmem [shape: f32[2,8,32], index: 1, kind: input, shape index: {}]   ;;  %s1472_s2 = inlined_call_operand.vmem [shape: f32[2,8,32], index: 2, kind: input, shape index: {}]   ;;  %s1473_s3 = inlined_call_operand.vmem [shape: f32[4,32,8], index: 3, kind: input, shape index: {}]   ;;  %s1474_s4 = inlined_call_operand.vmem [shape: f32[4,1,8], index: 4, kind: input, shape index: {}]   ;;  %s1475_s5 = inlined_call_operand.vmem [shape: f32[4,32,8], index: 5, kind: input, shape index: {}]   ;;  %s1476_s6 = inlined_call_operand.vmem [shape: f32[4,1,8], index: 6, kind: input, shape index: {}]   ;;  %s1477_s7 = inlined_call_operand.vmem [shape: f32[4,32,8], index: 7, kind: input, shape index: {}]   ;;  %s1478_s8 = inlined_call_operand.vmem [shape: f32[4,1,8], index: 8, kind: input, shape index: {}]   ;;  %s1479_s9 = inlined_call_operand.vmem [shape: f32[4,8,32], index: 9, kind: input, shape index: {}]   ;;  %s1480_s10 = inlined_call_operand.vmem [shape: f32[1,32], index: 10, kind: input, shape index: {}]   ;;  %s1481_s11 = inlined_call_operand.hbm [shape: f32[2,8,32], index: 11, kind: output, shape index: {}]  }
   0x1   :  { %1495 = sst [smem:[#allocation19_spill]] %s1473_s3 }
   0x2   :  { %1496 = sst [smem:[#allocation20_spill]] %s1475_s5 }
   0x3   :  { %1497 = sst [smem:[#allocation21_spill]] %s1481_s11 }
   0x4   :  { %16 = vsyncpa [#allocation6], 0 }
   0x5   :  { %18 = vsyncpa [#allocation6 + $0x1], 0  ;;  %s1258_s17 = smov 0   ;;  %s1260_s18 = smov 0  }
   0x6   :  { %s1262_s19 = smov 0   ;;  %s1264_s20 = smov 0  }
   0x7   :  { %s1266_s21 = smov 0   ;;  %s1268_s22 = smov 0  }
   0x8   :  { %s1270_s23 = smov 0   ;;  %s1272_s24 = smov 0  }
   0x9 LB: > { %1498 = sst [smem:[#allocation8_spill]] %s1167_s17  ;;  %s987_s25 = sadd.s32 4294967295, %s1195_s24   ;;  %s1195_s24 = sphi %s1272_s24, %s24_s24   ;;  %s1191_s23 = sphi %s1270_s23, %s1528_s23   ;;  %s1187_s22 = sphi %s1268_s22, %s1527_s22   ;;  %s1183_s21 = sphi %s1266_s21, %s1526_s21   ;;  %s1179_s20 = sphi %s1264_s20, %s1525_s20   ;;  %s1175_s19 = sphi %s1262_s19, %s1524_s19   ;;  %s1171_s18 = sphi %s1260_s18, %s1523_s18   ;;  %s1167_s17 = sphi %s1258_s17, %s1522_s17  }
   0xa   : > { %1499 = sst [smem:[#allocation9_spill]] %s1171_s18  ;;  %s988_s26 = sadd.s32 4294967294, %s1195_s24  }
   0xb   : > { %1500 = sst [smem:[#allocation10_spill]] %s1175_s19  ;;  %s36_s27 = sadd.s32 1, %s1187_s22 }
   0xc   : > { %1501 = sst [smem:[#allocation11_spill]] %s1187_s22  ;;  %p37_p0 = scmp.ge.s32.totalorder %s36_s27, 4 }
   0xd   : > { %1502 = sst [smem:[#allocation12_spill]] %s1191_s23  ;;  %s43_s28 = sadd.s32 1, %s1191_s23 }
   0xe   : > { %1503 = sst [smem:[#allocation13_spill]] %s1195_s24  ;;  %p345_p1 = scmp.ne.s32.totalorder %s1175_s19, %s1171_s18 }
   0xf   : > { %p346_p2 = scmp.eq.s32.totalorder %s987_s25, 7  ;;  %s1530_s27 = smov (%p37_p0, %s36_s27), 0 }
  0x10   : > { %1504 = sst [smem:[#allocation14_spill]] %s1530_s27  ;;  %s1532_s28 = smov (!%p37_p0, %s43_s28), %s1191_s23 }
  0x11   : > { %p1307_p3 = por %p346_p2, %p345_p1  ;;  %p351_p4 = scmp.ne.s32.totalorder %s1171_s18, %s1167_s17 }
  0x12   : > { %p45_p5 = scmp.ge.s32.totalorder %s1532_s28, 2  ;;  %p352_p6 = scmp.eq.s32.totalorder %s988_s26, 7 }
  0x13   : > { %s1505_s29 = scalar_select %p1307_p3, 1, 0 }
  0x14   : > { %p991_p7 = scmp.ge.s32.totalorder %s1195_s24, 1  ;;  %p446_p8 = scmp.lt.s32.totalorder %s1195_s24, 9 }
  0x15   : > { %1506 = sst [smem:[#allocation15_spill]] %s1505_s29  ;;  %s1534_s28 = smov (%p45_p5, %s1532_s28), 0 }
  0x16   : > { %1507 = sst [smem:[#allocation16_spill]] %s1534_s28  ;;  %p1317_p9 = por %p352_p6, %p351_p4 }
  0x17   : > { %p447_p10 = pnand %p991_p7, %p446_p8  ;;  %s330_s12 = ssub.s32 %s1191_s23, %s1534_s28 }
  0x18   : > { %s1508_s30 = scalar_select %p1317_p9, 1, 0 }
  0x19   : > { %s335_s13 = sadd.s32 1, %s1175_s19  ;;  %p333_p11 = scmp.eq.s32.totalorder %s330_s12, 0 }
  0x1a   : > { %1509 = sst [smem:[#allocation17_spill]] %s1508_s30  ;;  %450 = sbr.rel (%p447_p10) target bundleno = 1001 (0x3e9), region = 64 }
  0x1b   : > { %s1325_s14 = scalar_select %p333_p11, %s1175_s19, %s335_s13  }
  0x1c   : > { %s1486_s15 = sand.u32 (!%p447_p10), 1, %s1171_s18   ;;  %p539_p12 = scmp.lt.s32.totalorder (!%p447_p10), %s1179_s20, 3 }
  0x1d   : > { %1510 = sst [smem:[#allocation18_spill]] %s1325_s14  ;;  %s1331_s16 = sshll.u32 (!%p447_p10), %s1486_s15, 3 }
  0x1e   : > { %p524_p13 = scmp.lt.s32.totalorder (!%p447_p10), %s1183_s21, 1  ;;  %s1511_s3 = sld [smem:[#allocation19_spill]] (!%p447_p10) }
  0x1f   : > { %s1335_s25 = scalar_select %p539_p12, %s1179_s20, 3  ;;  %vm581_vm0 = vcmask 261120   ;;  %vm638_vm1 = vcmask 64512  }
  0x20   : > { %s525_s26 = scalar_select %p524_p13, %s1183_s21, 1 }
  0x21   : > { %s1018_s12 = sshll.u32 %s1335_s25, 5  ;;  %s1512_s5 = sld [smem:[#allocation20_spill]] }
  0x22   : > { %s1002_s17 = sshll.u32 %s1335_s25, 3  ;;  %s559_s29 = scalar_lea.vmem %s1477_s7, %s1018_s12 }
  0x23   : > { %s1358_s13 = scalar_lea.vmem %s1479_s9, %s1002_s17  ;;  %v608_v2 = vld [vmem:[%s559_s29 + $0x18] sm:$0xff]  ;;  %v607_v3 = vld [vmem:[%s559_s29 + $0x10] sm:$0xff]  ;;  %s1360_s22 = sshll.u32 %s525_s26, 3  ;;  %v606_v5 = vld [vmem:[%s559_s29 + $0x8] sm:$0xff] }
  0x24   : > { %s1346_s14 = scalar_lea.vmem %s1511_s3, %s1018_s12  ;;  %628 = vmatpush.msra.mxu1 %v608_v2  ;;  %s530_s23 = scalar_lea.vmem %s1470_s0, %s1360_s22  ;;  %v605_v7 = vld [vmem:[%s559_s29] sm:$0xff] }
  0x25   : > { %s534_s18 = scalar_lea.vmem %s1471_s1, %s1360_s22  ;;  %s538_s26 = scalar_lea.vmem %s1472_s2, %s1360_s22 }
  0x26   : > { %s554_s3 = scalar_lea.vmem %s1476_s6, %s1335_s25  ;;  %629 = vmatpush.msra.mxu1 %v607_v3  ;;  %s562_s11 = scalar_lea.vmem %s1478_s8, %s1335_s25  ;;  %v571_v8 = vld [vmem:[%s534_s18] sm:$0xff] }
  0x27   : > { %s551_s30 = scalar_lea.vmem %s1512_s5, %s1018_s12  ;;  %v572_v9 = vld [vmem:[%s538_s26] sm:$0xff]  ;;  %s1005_s27 = sshll.u32 %s1179_s20, 3 }
  0x28   : > { %v576_v0 = vld [vmem:[%s551_s30 + $0x18] sm:$0xff]  ;;  %v575_v1 = vld [vmem:[%s551_s30 + $0x10] sm:$0xff]  ;;  %v574_v4 = vld [vmem:[%s551_s30 + $0x8] sm:$0xff]  ;;  %630 = vmatpush.msra.mxu1 %v606_v5  ;;  %s637_s5 = scalar_lea.vmem [#allocation2], %s1005_s27  ;;  %s1386_s29 = scalar_lea.vmem [#allocation3], %s1005_s27 }
  0x29   : > { %597 = vmatpush.msra.mxu0 %v576_v0  ;;  %v573_v6 = vld [vmem:[%s551_s30] sm:$0xff]  ;;  %s523_s30 = scalar_lea.vmem [#allocation5], %s1331_s16  ;;  %p1006_p0 = scmp.ne.s32.totalorder %s1179_s20, 0 }
  0x2a   : > { %631 = vmatpush.msra.mxu1 %v605_v7  ;;  %v1093_v10 = vld [vmem:[%s554_s3] ss:$0 sm:$0xff] }
  0x2b   : > { %598 = vmatpush.msra.mxu0 %v575_v1  ;;  %1004 = vmatmul.msk.f32.vlgmr.msra.gmra.mxu1 %vm581_vm0, %v572_v9  ;;  %v1094_v11 = vld [vmem:[%s562_s11] ss:$0 sm:$0xff] }
  0x2d   : > { %599 = vmatpush.msra.mxu0 %v574_v4 }
  0x2f   : > { %600 = vmatpush.msra.mxu0 %v573_v6 }
  0x30   : > { %1003 = vmatmul.msk.f32.vlgmr.msra.gmra.mxu0 %vm581_vm0, %v571_v8 }
  0xa8   : > { %v633_v14 = vpop.f32.mrf.mxu1 }
  0xa9   : > { %v634_v15 = vadd.f32 %v1094_v11, %v633_v14 }
  0xab   : > { %641 = vst.msk [vmem:[%s1386_s29] sm:$0xff] %vm638_vm1, %v634_v15 }
  0xac   : > { %645 = sbr.rel (%p1006_p0) target bundleno = 179 (0xb3), region = 72 }
  0xad   : > { %v602_v12 = vpop.f32.mrf.mxu0 }
  0xae   : > { %v603_v13 = vadd.f32 %v1093_v10, %v602_v12 }
  0xb0   : > { %639 = vst.msk [vmem:[%s637_s5] sm:$0xff] %vm638_vm1, %v603_v13 }
  0xb1   : > { %v1197_v16 = vmov 0.0  }
  0xb2   : > { %647 = vst.msk [vmem:[#allocation4] sm:$0xff] %vm581_vm0, %v1197_v16 }
  0xb3 PF: > { %v652_v17 = vld [vmem:[%s1346_s14 + $0x18] sm:$0xff]  ;;  %v651_v18 = vld [vmem:[%s1346_s14 + $0x10] sm:$0xff]  ;;  %v650_v19 = vld [vmem:[%s1346_s14 + $0x8] sm:$0xff]  ;;  %s1513_s17 = scalar_lea.vmem %s1474_s4, %s1335_s25  ;;  %p1013_p1 = scmp.ne.s32.totalorder %s1179_s20, 3 }
  0xb4   : > { %673 = vmatpush.msra.mxu2 %v652_v17  ;;  %v649_v20 = vld [vmem:[%s1346_s14] sm:$0xff] }
  0xb5   : > { %v648_v21 = vld [vmem:[%s530_s23] sm:$0xff] }
  0xb6   : > { %674 = vmatpush.msra.mxu2 %v651_v18  ;;  %v1095_v23 = vld [vmem:[%s1513_s17] ss:$0 sm:$0xff] }
  0xb7   : > { %v686_v34 = vld [vmem:[%s1386_s29] sm:$0xff] }
  0xb8   : > { %675 = vmatpush.msra.mxu2 %v650_v19  ;;  %v749_v38 = vld [vmem:[%s1358_s13] sm:$0xff] }
  0xb9   : > { %v684_v22 = vld [vmem:[%s637_s5] sm:$0xff]  ;;  %768 = vmatpush.msrb.mxu0 %v749_v38 }
  0xba   : > { %676 = vmatpush.msra.mxu2 %v649_v20  ;;  %1009 = vmatpush.xpose.msk.msra.mxu3 %vm638_vm1, %v684_v22  ;;  %v748_v40 = vld [vmem:[#allocation4] sm:$0xff] }
  0xbb   : > { %1007 = vmatmul.msk.f32.vlgmr.msra.gmra.mxu2 %vm581_vm0, %v648_v21 }
  0xbe   : > { %743 = vmatpush.msrb.mxu3 %v686_v34 }
 0x13e   : > { %v678_v24 = vpop.f32.mrf.mxu2 }
 0x13f   : > { %v679_v25 = vadd.f32 %v1095_v23, %v678_v24 }
 0x141   : > { %v681_v26 = vmul.f32 0.35355338, %v679_v25 }
 0x143   : > { %1010 = vmatmul.msk.f32.vlgmr.msra.gmra.mxu3 %vm638_vm1, %v681_v26 }
 0x1c6   : > { %v711_v27 = vpop.f32.mrf.mxu3 }
 0x1c7   : > { %v714_v28 = vsel %vm638_vm1, %v711_v27, -inf }
 0x1c8   : > { %715 = vmax.xlane.f32.xlu0 %v714_v28 }
 0x23b   : > { %v716_v29 = vpop.xlane.xlu0 %715 }
 0x23c   : > { %v717_v30 = vsub.f32 %v711_v27, %v716_v29 }
 0x23e   : > { %v718_v31 = vmul.f32 1.442695, %v717_v30 }
 0x240   : > { %1096 = vpow2.f32 %v718_v31 }
 0x246   : > { %v1097_v32 = vpop.eup %1096 }
 0x247   : > { %v720_v33 = vsel %vm638_vm1, %v1097_v32, 0.0 }
 0x248   : > { %721 = vadd.xlane.f32.xlu0 %v720_v33 }
 0x2bb   : > { %v722_v35 = vpop.xlane.xlu0 %721 }
 0x2bc   : > { %1098 = vrcp.f32 %v722_v35 }
 0x2c2   : > { %v1099_v36 = vpop.eup %1098 }
 0x2c3   : > { %v724_v37 = vmul.f32 %v1099_v36, %v1097_v32 }
 0x2c5   : > { %1011 = vmatmul.msk.f32.vlgmr.msrb.gmra.mxu3 %vm638_vm1, %v724_v37 }
 0x348   : > { %v745_v39 = vpop.f32.mrf.mxu3 }
 0x349   : > { %1012 = vmatmul.msk.f32.vlgmr.msrb.gmra.mxu0 %vm638_vm1, %v745_v39 }
 0x3c5   : > { %778 = sbr.rel (%p1013_p1) target bundleno = 980 (0x3d4), region = 76 }
 0x3c6   : > { %v770_v41 = vpop.f32.mrf.mxu0 }
 0x3c7   : > { %v773_v42 = vadd.f32 %v770_v41, %v748_v40 }
 0x3c9   : > { %774 = vst.msk [vmem:[#allocation4] sm:$0xff] %vm581_vm0, %v773_v42 }
 0x3ca   : > { %v1100_v44 = vld [vmem:[%s1480_s10] ss:$0 sm:$0xff] }
 0x3d0   : > { %v779_v43 = vld [vmem:[#allocation4] sm:$0xff] }
 0x3d1   : > { %v784_v45 = vadd.f32 %v1100_v44, %v779_v43 }
 0x3d3   : > { %785 = vst.msk [vmem:[%s523_s30] sm:$0xff] %vm581_vm0, %v784_v45 }
 0x3d4 PF: > { %s1514_s13 = sld [smem:[#allocation9_spill]]  ;;  %s1015_s23 = sshll.u32 %s1183_s21, 3 }
 0x3d5   : > { %s1516_s20 = sld [smem:[#allocation21_spill]]  ;;  %s800_s11 = sshll.u32 %s523_s30, 4  ;;  %s801_s11 = int_to_ptr.vmem [resolvable:$true] %s800_s11 }
 0x3da   : > { %s1518_s5 = sand.u32 1, %s1514_s13  }
 0x3db   : > { %s1517_s28 = smov %s1516_s20  ;;  %s798_s19 = scalar_lea.hbm %s1516_s20, %s1015_s23 }
 0x3dc   : > { %s802_s27 = sshll.u32 %s798_s19, 4  ;;  %s787_s29 = scalar_lea.sflag [#allocation6], %s1518_s5  ;;  %s803_s27 = int_to_ptr.hbm [resolvable:$true] %s802_s27 }
 0x3dd   : > { %s1115_s3 = sshra.s32 %s803_s27, 4  ;;  %s1121_s18 = scalar_lea.hbm %s1517_s28, 16  ;;  %s1116_s3 = int_to_ptr.hbm [resolvable:$true] %s1115_s3 }
 0x3de   : > { %s1117_s24 = scalar_lea.hbm %s1116_s3, 8  ;;  %p1122_p6 = scmp.lt.s32.totalorder %s1116_s3, %s1517_s28 }
 0x3df   : > { %p1118_p2 = scmp.ne.s32.totalorder %s1116_s3, %s1117_s24  ;;  %p1123_p7 = scmp.lt.s32.totalorder %s1121_s18, %s1117_s24 }
 0x3e1   : > { %p1119_p4 = pnand %p1118_p2, %p1307_p3  ;;  %p1124_p8 = por %p1123_p7, %p1122_p6 }
 0x3e3   : > { %p1120_p5 = pneg %p1119_p4 }
 0x3e5   : > { %p1125_p10 = pnand %p1124_p8, %p1120_p5 }
 0x3e7   : > { %1128 = shalt.err (!%p1125_p10)
}
 0x3e8   : > { %1021 = dma.vmem_to_hbm [thread:$0]  (%p1307_p3), %s801_s11, 128, %s803_s27, %s787_s29  }
 0x3e9 PF: > { %s1519_s16 = sld [smem:[#allocation13_spill]] }
 0x3ea   : > { %s1520_s30 = sld [smem:[#allocation8_spill]] }
 0x3ef   : > { %p1027_p11 = scmp.ge.s32.totalorder %s1519_s16, 2 }
 0x3f0   : > { %s814_s13 = sand.u32 1, %s1520_s30  }
 0x3f1   : > { %p1024_p12 = pnand %p1027_p11, %p1317_p9  ;;  %s815_s23 = scalar_lea.sflag [#allocation6], %s814_s13 }
 0x3f3   : > { %p1025_p13 = pneg %p1024_p12 }
 0x3f5   : > { %1162 = dma.done.wait (%p1025_p13), %s815_s23, 128  }
 0x3f6   : > { %1164 = vsyncadd (%p1025_p13), %s815_s23, 4294967168  ;;  %s24_s24 = sadd.s32 1, %s1519_s16   ;;  %s1522_s17 = sld [smem:[#allocation9_spill]] }
 0x3f7   : > { %p21_p0 = scmp.ge.s32.totalorder %s24_s24, 10   ;;  %s1523_s18 = sld [smem:[#allocation10_spill]] }
 0x3f8   : > { %s1524_s19 = sld [smem:[#allocation18_spill]] }
 0x3f9   : > { %s1525_s20 = sld [smem:[#allocation11_spill]]  ;;  %23 = sbr.rel (!%p21_p0) target bundleno = 9 (0x9), region = 142 }
 0x3fa   : > { %s1526_s21 = sld [smem:[#allocation12_spill]] }
 0x3fb   : > { %s1527_s22 = sld [smem:[#allocation14_spill]] }
 0x3fc   : > { %s1528_s23 = sld [smem:[#allocation16_spill]] }
 0x3fe   :  { %821 = vsyncpa [#allocation6], 1 }
 0x3ff   :  { %823 = vsyncpa [#allocation6 + $0x1], 1 }

</bundles_post_ra>
